<compile_context>
chip_gen: v6e
topology: v6e:2x2x1
jax: 0.10.0
libtpu: 0.0.40
codegen_flags: <defaults>
</compile_context>

<pallas_src>
import jax
import jax.numpy as jnp
from jax.experimental import pallas as pl
from jax.experimental.pallas import tpu as pltpu

EPS = 1e-5
LANE = 128


def _round_up(x, m):
    return ((x + m - 1) // m) * m


def _resnet_block_kernel(x_ref, w1_ref, b1_ref, w2_ref, b2_ref, o_ref, acc_ref):
    """One (batch-tile i, hidden-tile j) grid step.

    x_ref  : [tb, d]   activation tile (native dtype)
    w1_ref : [d, th]   BN-folded Linear1 weights (bf16)
    b1_ref : [1, th]   BN-folded Linear1 bias (f32)
    w2_ref : [th, d]   Linear2 weights (bf16)
    b2_ref : [1, d]    Linear2 bias (f32)
    o_ref  : [tb, d]   output tile (x dtype)
    acc_ref: [tb, d]   f32 Linear2 accumulator across hidden tiles
    """
    j = pl.program_id(1)

    @pl.when(j == 0)
    def _():
        acc_ref[...] = jnp.zeros_like(acc_ref)

    x = x_ref[...]

    # --- Linear1 (BN pre-folded) + ReLU: bf16 MXU operands, f32 accumulation. ---
    h = jnp.dot(x.astype(jnp.bfloat16), w1_ref[...],
                preferred_element_type=jnp.float32)
    h = jnp.maximum(h + b1_ref[...], 0.0)
    # TODO(synk): hidden dropout omitted (eval-mode identity).

    # --- Partial Linear2 contribution of this hidden tile. ---
    acc_ref[...] += jnp.dot(h.astype(jnp.bfloat16), w2_ref[...],
                            preferred_element_type=jnp.float32)

    @pl.when(j == pl.num_programs(1) - 1)
    def _():
        # Residual add in f32; residual dropout omitted (eval-mode identity).
        out = x.astype(jnp.float32) + acc_ref[...] + b2_ref[...]
        o_ref[...] = out.astype(o_ref.dtype)


def _vmem_bytes(tb, th, nh, d, xbytes, obytes):
    """Working-set estimate: weight blocks + double-buffered I/O tiles + intermediates."""
    nbuf_w = 1 if nh == 1 else 2                    # grid-invariant weights -> Buffered(1)
    w = nbuf_w * (2 * d * th * 2 + th * 4)          # w1 + w2 blocks (bf16), b1 block (f32)
    w += d * 4                                      # b2
    io = 2 * tb * d * xbytes + 2 * tb * d * obytes  # x / out tiles, double-buffered
    inter = tb * th * 4 + tb * th * 2 + tb * d * 2  # f32 h, bf16 h cast, bf16 x cast
    acc = tb * d * 4                                # f32 accumulator scratch
    return w + io + inter + acc


def resnet_block(x, gamma, beta, running_mean, running_var, w1, b1, w2, b2,
                 *, tb=None, th=None):
    """x: [N, d]; w1: [d, d_hidden]; w2: [d_hidden, d]; 1-D params length d / d_hidden.

    Output has the same shape/dtype as x.  Pass bf16 activations on memory-bound
    parts to halve HBM traffic; residual accumulation is f32 in-kernel.
    """
    N, d = x.shape
    d_hidden = w1.shape[1]
    assert w1.shape == (d, d_hidden) and w2.shape == (d_hidden, d)

    f32 = jnp.float32
    xbytes = obytes = jnp.dtype(x.dtype).itemsize

    # ---- Fold BatchNorm1d (eval, running stats) exactly into the first Linear. ----
    inv_std = jax.lax.rsqrt(running_var.astype(f32) + EPS)          # [d]
    scale = gamma.astype(f32) * inv_std                             # [d]
    shift = beta.astype(f32) - running_mean.astype(f32) * scale     # [d]
    w1_f = scale[:, None] * w1.astype(f32)                          # [d, dh]
    b1_f = shift @ w1.astype(f32) + b1.astype(f32)                  # [dh]

    # ---- VMEM budget from the actual chip (~75% of capacity). ----
    try:
        vmem_cap = int(pltpu.get_tpu_info().vmem_capacity_bytes)
    except Exception:
        vmem_cap = 64 * 1024 * 1024                                 # conservative (v7x/TC)
    budget = (vmem_cap // 4) * 3

    # ---- Batch tile: multiple of the sublane packing; >=2 tiles when possible
    #      so both v7x TensorCores get work from the "parallel" axis. ----
    mult = 8 if xbytes >= 4 else 16
    if tb is None:
        if N <= 2 * mult:
            tb = N                                                  # single full-extent tile
        else:
            tb = min(_round_up(N, mult), 1024)
            if tb >= N:                                             # would be 1 tile -> split
                tb = _round_up(pl.cdiv(N, 2), mult)
    if not (tb == N or (tb > 0 and tb % mult == 0)):
        raise ValueError(f"tb={tb} must equal N or be a positive multiple of {mult}")

    # ---- Hidden tile: multiple of 128, shrunk until the working set fits. ----
    dhp0 = _round_up(d_hidden, LANE)
    if th is None:
        th = dhp0
        while th > LANE:
            nh_try = _round_up(d_hidden, th) // th
            if _vmem_bytes(tb, th, nh_try, d, xbytes, obytes) <= budget:
                break
            th = _round_up(max(th // 2, LANE), LANE)
    if th % LANE != 0:
        raise ValueError(f"th={th} must be a multiple of {LANE}")
    dhp = _round_up(d_hidden, th)
    nh = dhp // th

    # If still over budget, shrink the batch tile (never below one packed sublane group).
    while (_vmem_bytes(tb, th, nh, d, xbytes, obytes) > budget
           and tb % mult == 0 and tb > mult):
        tb = _round_up(max(tb // 2, mult), mult)

    nb = pl.cdiv(N, tb)
    grid = (nb, nh)

    # ---- Lane-pad ONLY the weights/biases (exact: padded hidden units produce 0). ----
    w1_p = jnp.zeros((d, dhp), f32).at[:, :d_hidden].set(w1_f).astype(jnp.bfloat16)
    w2_p = jnp.zeros((dhp, d), f32).at[:d_hidden, :].set(w2.astype(f32)).astype(jnp.bfloat16)
    b1_p = jnp.zeros((1, dhp), f32).at[0, :d_hidden].set(b1_f)
    b2_p = b2.astype(f32).reshape(1, d)

    weight_bytes = (2 * d * dhp) * 2 + (dhp + d) * 4
    cost = pl.CostEstimate(
        flops=4 * N * d * dhp,                                      # two matmuls
        transcendentals=0,
        bytes_accessed=N * d * (xbytes + obytes) + weight_bytes)

    est = _vmem_bytes(tb, th, nh, d, xbytes, obytes)
    vmem_limit = int(min(budget, max(est + (8 << 20), 32 << 20)))

    def _run(use_buffered):
        def wspec(shape, index_map, invariant):
            if use_buffered and invariant:
                # Grid-invariant block: single buffer halves its VMEM footprint.
                return pl.BlockSpec(shape, index_map, pipeline_mode=pl.Buffered(1))
            return pl.BlockSpec(shape, index_map)

        return pl.pallas_call(
            _resnet_block_kernel,
            out_shape=jax.ShapeDtypeStruct((N, d), x.dtype),
            grid_spec=pltpu.PrefetchScalarGridSpec(
                num_scalar_prefetch=0,
                grid=grid,
                in_specs=[
                    pl.BlockSpec((tb, d), lambda i, j: (i, 0)),     # x tile (unpadded)
                    wspec((d, th), lambda i, j: (0, j), nh == 1),   # w1 (BN folded, bf16)
                    wspec((1, th), lambda i, j: (0, j), nh == 1),   # b1 (folded, f32)
                    wspec((th, d), lambda i, j: (j, 0), nh == 1),   # w2 (bf16)
                    wspec((1, d), lambda i, j: (0, 0), True),       # b2 (f32)
                ],
                out_specs=pl.BlockSpec((tb, d), lambda i, j: (i, 0)),
                scratch_shapes=[pltpu.VMEM((tb, d), jnp.float32)],  # Linear2 accumulator
            ),
            compiler_params=pltpu.CompilerParams(
                dimension_semantics=("parallel", "arbitrary"),
                vmem_limit_bytes=vmem_limit),
            cost_estimate=cost,
        )(x, w1_p, b1_p, w2_p, b2_p)

    if not hasattr(pl, "Buffered"):
        return _run(False)
    try:
        return _run(True)
    except (TypeError, NotImplementedError, ValueError):
        # Narrow fallback: this JAX build rejects pipeline_mode=Buffered(1).
        return _run(False)


def resnet_block_ref(x, gamma, beta, running_mean, running_var, w1, b1, w2, b2):
    """Pure-JAX f32 reference (eval-mode PyTorch semantics)."""
    x = x.astype(jnp.float32)
    h = (x - running_mean) * jax.lax.rsqrt(running_var + EPS) * gamma + beta
    h = jnp.maximum(h @ w1 + b1, 0.0)
    h = h @ w2 + b2
    return x + h


def _make_params(key, d, d_hidden):
    keys = jax.random.split(key, 9)
    gamma = 1.0 + 0.1 * jax.random.normal(keys[1], (d,), dtype=jnp.float32)
    beta = 0.1 * jax.random.normal(keys[2], (d,), dtype=jnp.float32)
    running_mean = 0.1 * jax.random.normal(keys[3], (d,), dtype=jnp.float32)
    running_var = jnp.abs(1.0 + 0.1 * jax.random.normal(keys[4], (d,), dtype=jnp.float32))
    # nn.Linear weights are [out, in]; pre-transpose to [in, out] for the kernel.
    w1 = (jax.random.normal(keys[5], (d_hidden, d), dtype=jnp.float32) / jnp.sqrt(d)).T
    b1 = 0.01 * jax.random.normal(keys[6], (d_hidden,), dtype=jnp.float32)
    w2 = (jax.random.normal(keys[7], (d, d_hidden), dtype=jnp.float32) / jnp.sqrt(d_hidden)).T
    b2 = 0.01 * jax.random.normal(keys[8], (d,), dtype=jnp.float32)
    return keys[0], gamma, beta, running_mean, running_var, w1, b1, w2, b2


if __name__ == "__main__":
    key = jax.random.PRNGKey(0)
    k1, k2 = jax.random.split(key)

    # --- Test 1: small shapes, f32 activation I/O, single hidden tile. ---
    N, d, d_hidden = 8, 32, 64
    kx, gamma, beta, rm, rv, w1, b1, w2, b2 = _make_params(k1, d, d_hidden)
    x = jax.random.normal(kx, (N, d), dtype=jnp.float32)

    out = jax.block_until_ready(resnet_block(x, gamma, beta, rm, rv, w1, b1, w2, b2))
    ref = resnet_block_ref(x, gamma, beta, rm, rv, w1, b1, w2, b2)
    assert out.shape == (N, d) and out.dtype == x.dtype
    # bf16 MXU operands with f32 accumulation -> loose tolerance vs f32 reference.
    assert jnp.allclose(out, ref, atol=5e-2, rtol=5e-2), "f32 mismatch vs reference"

    # --- Test 2: bf16 activation I/O (halves HBM traffic on mem-bound parts). ---
    out_bf16 = jax.block_until_ready(
        resnet_block(x.astype(jnp.bfloat16), gamma, beta, rm, rv, w1, b1, w2, b2))
    assert out_bf16.dtype == jnp.bfloat16
    assert jnp.allclose(out_bf16.astype(jnp.float32), ref, atol=1.5e-1, rtol=1e-1), \
        "bf16 mismatch vs reference"

    # --- Test 3: forced batch + hidden split (ragged N, accumulator path). ---
    N2, d2, dh2 = 40, 24, 192
    kx2, gamma2, beta2, rm2, rv2, w1b, b1b, w2b, b2b = _make_params(k2, d2, dh2)
    x2 = jax.random.normal(kx2, (N2, d2), dtype=jnp.float32)
    out2 = jax.block_until_ready(
        resnet_block(x2, gamma2, beta2, rm2, rv2, w1b, b1b, w2b, b2b, tb=16, th=128))
    ref2 = resnet_block_ref(x2, gamma2, beta2, rm2, rv2, w1b, b1b, w2b, b2b)
    assert out2.shape == (N2, d2)
    assert jnp.allclose(out2, ref2, atol=5e-2, rtol=5e-2), "split-path mismatch vs reference"

    print("KERNEL_OK")
</pallas_src>

<mosaic_0001>
module attributes {stable_mosaic.version = 11 : i64} {
  func.func @_resnet_block_kernel(%arg0: i32, %arg1: i32, %arg2: memref<8x32xf32, #tpu.memory_space<vmem>>, %arg3: memref<32x128xbf16, #tpu.memory_space<vmem>>, %arg4: memref<1x128xf32, #tpu.memory_space<vmem>>, %arg5: memref<128x32xbf16, #tpu.memory_space<vmem>>, %arg6: memref<1x32xf32, #tpu.memory_space<vmem>>, %arg7: memref<8x32xf32, #tpu.memory_space<vmem>>, %arg8: memref<8x32xf32, #tpu.memory_space<vmem>>) attributes {dimension_semantics = [#tpu.dimension_semantics<parallel>, #tpu.dimension_semantics<arbitrary>], iteration_bounds = array<i64: 1, 1>, scalar_prefetch = 0 : i64, scratch_operands = 1 : i64, tpu.core_type = #tpu.core_type<tc>, window_params = [{transform_indices = @transform_0, window_bounds = array<i64: 8, 32>}, {pipeline_mode = #tpu.pipeline_mode<synchronous>, transform_indices = @transform_1, window_bounds = array<i64: 32, 128>}, {pipeline_mode = #tpu.pipeline_mode<synchronous>, transform_indices = @transform_2, window_bounds = array<i64: 1, 128>}, {pipeline_mode = #tpu.pipeline_mode<synchronous>, transform_indices = @transform_3, window_bounds = array<i64: 128, 32>}, {pipeline_mode = #tpu.pipeline_mode<synchronous>, transform_indices = @transform_4, window_bounds = array<i64: 1, 32>}, {transform_indices = @transform_5, window_bounds = array<i64: 8, 32>}]} {
    %c0_i32 = arith.constant 0 : i32
    %0 = arith.cmpi eq, %arg1, %c0_i32 : i32
    %1 = arith.extui %0 : i1 to i32
    %c0_i32_0 = arith.constant 0 : i32
    %2 = arith.cmpi ne, %1, %c0_i32_0 : i32
    scf.if %2 {
      %cst_16 = arith.constant 0.000000e+00 : f32
      %21 = vector.broadcast %cst_16 : f32 to vector<8x32xf32>
      %c0_17 = arith.constant 0 : index
      %c0_18 = arith.constant 0 : index
      %22 = vector.load %arg8[%c0_17, %c0_18] : memref<8x32xf32, #tpu.memory_space<vmem>>, vector<8x32xf32>
      tpu.vector_store %arg8[%c0_17, %c0_18], %21 {strides = array<i32>} : memref<8x32xf32, #tpu.memory_space<vmem>>, vector<8x32xf32>,
    } else {
    }
    %c0 = arith.constant 0 : index
    %c0_1 = arith.constant 0 : index
    %3 = vector.load %arg2[%c0, %c0_1] : memref<8x32xf32, #tpu.memory_space<vmem>>, vector<8x32xf32>
    %4 = arith.truncf %3 : vector<8x32xf32> to vector<8x32xbf16>
    %c0_2 = arith.constant 0 : index
    %c0_3 = arith.constant 0 : index
    %5 = vector.load %arg3[%c0_2, %c0_3] : memref<32x128xbf16, #tpu.memory_space<vmem>>, vector<32x128xbf16>
    %cst = arith.constant dense<0.000000e+00> : vector<8x128xf32>
    %6 = tpu.matmul %4, %5, %cst {dimension_numbers = #tpu.dot_dimension_numbers<[1], [0], [0], [1], [0, 0, 1, 1], [], []>} : vector<8x32xbf16>, vector<32x128xbf16>, vector<8x128xf32> -> vector<8x128xf32>
    %c0_4 = arith.constant 0 : index
    %c0_5 = arith.constant 0 : index
    %7 = vector.load %arg4[%c0_4, %c0_5] : memref<1x128xf32, #tpu.memory_space<vmem>>, vector<1x128xf32>
    %8 = vector.broadcast %7 : vector<1x128xf32> to vector<8x128xf32>
    %9 = arith.addf %6, %8 : vector<8x128xf32>
    %cst_6 = arith.constant 0.000000e+00 : f32
    %10 = vector.broadcast %cst_6 : f32 to vector<8x128xf32>
    %11 = arith.maximumf %9, %10 : vector<8x128xf32>
    %c0_7 = arith.constant 0 : index
    %c0_8 = arith.constant 0 : index
    %12 = vector.load %arg8[%c0_7, %c0_8] : memref<8x32xf32, #tpu.memory_space<vmem>>, vector<8x32xf32>
    %13 = arith.truncf %11 : vector<8x128xf32> to vector<8x128xbf16>
    %c0_9 = arith.constant 0 : index
    %c0_10 = arith.constant 0 : index
    %14 = vector.load %arg5[%c0_9, %c0_10] : memref<128x32xbf16, #tpu.memory_space<vmem>>, vector<128x32xbf16>
    %cst_11 = arith.constant dense<0.000000e+00> : vector<8x32xf32>
    %15 = tpu.matmul %13, %14, %cst_11 {dimension_numbers = #tpu.dot_dimension_numbers<[1], [0], [0], [1], [0, 0, 1, 1], [], []>} : vector<8x128xbf16>, vector<128x32xbf16>, vector<8x32xf32> -> vector<8x32xf32>
    %16 = arith.addf %12, %15 : vector<8x32xf32>
    %c0_12 = arith.constant 0 : index
    %c0_13 = arith.constant 0 : index
    %17 = vector.load %arg8[%c0_12, %c0_13] : memref<8x32xf32, #tpu.memory_space<vmem>>, vector<8x32xf32>
    tpu.vector_store %arg8[%c0_12, %c0_13], %16 {strides = array<i32>} : memref<8x32xf32, #tpu.memory_space<vmem>>, vector<8x32xf32>,
    %c0_i32_14 = arith.constant 0 : i32
    %18 = arith.cmpi eq, %arg1, %c0_i32_14 : i32
    %19 = arith.extui %18 : i1 to i32
    %c0_i32_15 = arith.constant 0 : i32
    %20 = arith.cmpi ne, %19, %c0_i32_15 : i32
    scf.if %20 {
      %c0_16 = arith.constant 0 : index
      %c0_17 = arith.constant 0 : index
      %21 = vector.load %arg8[%c0_16, %c0_17] : memref<8x32xf32, #tpu.memory_space<vmem>>, vector<8x32xf32>
      %22 = arith.addf %3, %21 : vector<8x32xf32>
      %c0_18 = arith.constant 0 : index
      %c0_19 = arith.constant 0 : index
      %23 = vector.load %arg6[%c0_18, %c0_19] : memref<1x32xf32, #tpu.memory_space<vmem>>, vector<1x32xf32>
      %24 = vector.broadcast %23 : vector<1x32xf32> to vector<8x32xf32>
      %25 = arith.addf %22, %24 : vector<8x32xf32>
      %c0_20 = arith.constant 0 : index
      %c0_21 = arith.constant 0 : index
      %26 = vector.load %arg7[%c0_20, %c0_21] : memref<8x32xf32, #tpu.memory_space<vmem>>, vector<8x32xf32>
      tpu.vector_store %arg7[%c0_20, %c0_21], %25 {strides = array<i32>} : memref<8x32xf32, #tpu.memory_space<vmem>>, vector<8x32xf32>,
    } else {
    }
    return
  }
  func.func @transform_0(%arg0: i32, %arg1: i32) -> (i32, i32) {
    %c0_i32 = arith.constant 0 : i32
    %c0_i32_0 = arith.constant 0 : i32
    return %arg0, %c0_i32 : i32, i32
  }
  func.func @transform_1(%arg0: i32, %arg1: i32) -> (i32, i32) {
    %c0_i32 = arith.constant 0 : i32
    %c0_i32_0 = arith.constant 0 : i32
    return %c0_i32, %arg1 : i32, i32
  }
  func.func @transform_2(%arg0: i32, %arg1: i32) -> (i32, i32) {
    %c0_i32 = arith.constant 0 : i32
    %c0_i32_0 = arith.constant 0 : i32
    return %c0_i32, %arg1 : i32, i32
  }
  func.func @transform_3(%arg0: i32, %arg1: i32) -> (i32, i32) {
    %c0_i32 = arith.constant 0 : i32
    %c0_i32_0 = arith.constant 0 : i32
    return %arg1, %c0_i32 : i32, i32
  }
  func.func @transform_4(%arg0: i32, %arg1: i32) -> (i32, i32) {
    %c0_i32 = arith.constant 0 : i32
    %c0_i32_0 = arith.constant 0 : i32
    %c0_i32_1 = arith.constant 0 : i32
    return %c0_i32, %c0_i32_0 : i32, i32
  }
  func.func @transform_5(%arg0: i32, %arg1: i32) -> (i32, i32) {
    %c0_i32 = arith.constant 0 : i32
    %c0_i32_0 = arith.constant 0 : i32
    return %arg0, %c0_i32 : i32, i32
  }
}

</mosaic_0001>

<bundles_post_ra>
// kernel: tpu_custom_call.1
= control target key start
LH: loop header
LB: loop body
LE: loop exit
PB: predicated region body
PF: predicated region fallthrough
CT: control target
= control target key end

     0   :  { %v322_v1 = vmov 0.0   ;;  %vm323_vm0 = vmmov 0   ;;  %vm26_vm1 = vcmask 261120   ;;  %s401_s0 = inlined_call_operand.vmem [shape: f32[8,32], index: 0, kind: input, shape index: {}]   ;;  %s402_s1 = inlined_call_operand.vmem [shape: bf16[32,128], index: 1, kind: input, shape index: {}]   ;;  %s403_s2 = inlined_call_operand.vmem [shape: f32[1,128], index: 2, kind: input, shape index: {}]   ;;  %s404_s3 = inlined_call_operand.vmem [shape: bf16[128,32], index: 3, kind: input, shape index: {}]   ;;  %s405_s4 = inlined_call_operand.vmem [shape: f32[1,32], index: 4, kind: input, shape index: {}]   ;;  %s406_s5 = inlined_call_operand.hbm [shape: f32[8,32], index: 5, kind: output, shape index: {}]  }
   0x1   :  { %v290_v0 = vld [vmem:[%s402_s1 + $0x8] sm:$0xff]   ;;  %259 = vmatprep.subr.bf16.mxu0 %v322_v1  ;;  %v291_v2 = vld [vmem:[%s402_s1] sm:$0xff]   ;;  %267 = vmatprep.subr.bf16.mxu1 %v322_v1  ;;  %27 = vst.msk [vmem:[#allocation2] sm:$0xff] %vm26_vm1, %v322_v1  ;;  %v292_v4 = vld [vmem:[%s404_s3 + $0x38] sm:$0xff]  }
   0x2   :  { %260 = vmatpush3.bf16.msra.mxu0 %v290_v0  ;;  %263 = vmatprep.mubr.msk.bf16.mxu0 %vm323_vm0, %v322_v1  ;;  %v28_v3 = vld [vmem:[%s401_s0] sm:$0xff]  ;;  %v293_v6 = vld [vmem:[%s404_s3 + $0x30] sm:$0xff]   ;;  %v294_v7 = vld [vmem:[%s404_s3 + $0x28] sm:$0xff]  }
   0x3   :  { %261 = vmatprep.subr.bf16.mxu0 %v322_v1  ;;  %283 = vmatprep.mubr.msk.bf16.mxu1 %vm323_vm0, %v322_v1  ;;  %v29_v5 = vpack.c.bf16 %v28_v3, %v28_v3 }
   0x4   :  { %268 = vmatpush3.bf16.msra.mxu1 %v292_v4 }
   0x5   :  { %269 = vmatprep.subr.bf16.mxu1 %v322_v1 }
   0x6   :  { %262 = vmatpush3.bf16.msra.mxu0 %v291_v2 }
   0x8   :  { %270 = vmatpush3.bf16.msra.mxu1 %v293_v6 }
   0x9   :  { %264 = vmatmul.mubr.msk.bf16.vlgmr.msra.gmra.mxu0 %vm26_vm1, %v29_v5  ;;  %271 = vmatprep.subr.bf16.mxu1 %v322_v1 }
   0xa   :  { %10 = vsyncpa [#allocation4], 0  ;;  %v295_v8 = vld [vmem:[%s404_s3 + $0x20] sm:$0xff]   ;;  %v296_v9 = vld [vmem:[%s404_s3 + $0x18] sm:$0xff]  }
   0xb   :  { %v297_v10 = vld [vmem:[%s404_s3 + $0x10] sm:$0xff]   ;;  %v298_v11 = vld [vmem:[%s404_s3 + $0x8] sm:$0xff]   ;;  %v299_v12 = vld [vmem:[%s404_s3] sm:$0xff]  }
   0xc   :  { %272 = vmatpush3.bf16.msra.mxu1 %v294_v7  ;;  %v234_v13 = vld [vmem:[%s403_s2] ss:$0 sm:$0xff]  ;;  %s324_s2 = smov [#allocation3]  }
   0xd   :  { %273 = vmatprep.subr.bf16.mxu1 %v322_v1  ;;  %v98_v21 = vld [vmem:[#allocation2] sm:$0xff]  ;;  %s226_s16 = sshll.u32 %s324_s2, 4  ;;  %s227_s16 = int_to_ptr.vmem [resolvable:$true] %s226_s16 }
   0xe   :  { %v246_v28 = vld [vmem:[%s405_s4] ss:$0 sm:$0xff]  ;;  %s300_s17 = scalar_lea.vmem %s227_s16, 128  ;;  %p305_p1 = scmp.lt.s32.totalorder %s227_s16, %s227_s16 }
   0xf   :  { %p301_p0 = scmp.ne.s32.totalorder %s227_s16, %s300_s17  ;;  %p306_p2 = scmp.lt.s32.totalorder %s300_s17, %s300_s17 }
  0x10   :  { %274 = vmatpush3.bf16.msra.mxu1 %v295_v8 }
  0x11   :  { %275 = vmatprep.subr.bf16.mxu1 %v322_v1  ;;  %p307_p3 = por %p306_p2, %p305_p1 }
  0x13   :  { %p308_p4 = pnand %p307_p3, %p301_p0 }
  0x14   :  { %276 = vmatpush3.bf16.msra.mxu1 %v296_v9 }
  0x15   :  { %277 = vmatprep.subr.bf16.mxu1 %v322_v1 }
  0x18   :  { %278 = vmatpush3.bf16.msra.mxu1 %v297_v10 }
  0x19   :  { %279 = vmatprep.subr.bf16.mxu1 %v322_v1 }
  0x1c   :  { %280 = vmatpush3.bf16.msra.mxu1 %v298_v11 }
  0x1d   :  { %281 = vmatprep.subr.bf16.mxu1 %v322_v1 }
  0x20   :  { %282 = vmatpush3.bf16.msra.mxu1 %v299_v12 }
  0xc9   :  { %v91_v14 = vpop.f32.mrf.mxu0 }
  0xca   :  { %v92_v15 = vadd.f32 %v234_v13, %v91_v14 }
  0xcb   :  { %v265_v16 = vpop.f32.mrf.mxu0 }
  0xcc   :  { %v97_v17 = vmax.f32 %v92_v15, 0.0 }
  0xcd   :  { %v94_v18 = vpop.f32.mrf.mxu0 }
  0xce   :  { %v99_v19 = vpack.c.bf16 %v97_v17, %v97_v17 }
  0xcf   :  { %v266_v20 = vpop.f32.mrf.mxu0 }
  0xd0   :  { %284 = vmatmul.mubr.bf16.vlgmr.msra.gmra.mxu1 %v99_v19 }
 0x190   :  { %v198_v22 = vpop.f32.mrf.mxu1 }
 0x191   :  { %v204_v23 = vadd.f32 %v198_v22, %v98_v21 }
 0x192   :  { %v285_v24 = vpop.f32.mrf.mxu1 }
 0x193   :  { %205 = vst.msk [vmem:[#allocation2] sm:$0xff] %vm26_vm1, %v204_v23 }
 0x194   :  { %v201_v25 = vpop.f32.mrf.mxu1 }
 0x196   :  { %v286_v26 = vpop.f32.mrf.mxu1 }
 0x19a   :  { %v209_v27 = vld [vmem:[#allocation2] sm:$0xff] }
 0x19b   :  { %v210_v29 = vadd.f32 %v209_v27, %v28_v3 }
 0x19d   :  { %v218_v30 = vadd.f32 %v246_v28, %v210_v29 }
 0x19f   :  { %219 = vst.msk [vmem:[#allocation3] sm:$0xff] %vm26_vm1, %v218_v30 }
 0x1a0   :  { %311 = shalt.err (!%p308_p4)
}
 0x1a1   :  { %229 = dma.vmem_to_hbm [thread:$0]  %s227_s16, 128, %s406_s5, [#allocation4]  }
 0x1a2   :  { %320 = dma.done.wait [#allocation4], 128  }
 0x1a3   :  { %321 = vsyncadd [#allocation4], 4294967168 }
 0x1a4   :  { %233 = vsyncpa [#allocation4], 1 }

</bundles_post_ra>
